<compile_context>
chip_gen: v7x
topology: tpu7x:2x2x1
jax: 0.10.0
libtpu: 0.0.40
codegen_flags: <defaults>
</compile_context>

<pallas_src>
import jax
import jax.numpy as jnp
from jax.experimental import pallas as pl
from jax.experimental.pallas import tpu as pltpu


def _warp_kernel(scale_ref, trans_ref, x_ref, out_ref):
    # scale/trans: (1, L) rows (2*scale, 2*trans pre-folded, tiled with period 3);
    # x/out: (TR, L).  Broadcast over sublanes is free; single VPU multiply-add.
    out_ref[...] = x_ref[...] * scale_ref[...] + trans_ref[...]


def uniform_box_warp(
    coordinates,
    scale_factor,
    trans_factor,
    *,
    lane_width=1536,   # multiple of 384 = lcm(3, 128) -> lane-dense & xyz-aligned
    block_rows=512,    # ~3 MiB f32 tiles: saturates HBM BW, fits all VMEM budgets
    vmem_limit_bytes=None,
):
    """coordinates: (..., 3) f32; scale_factor/trans_factor: (1, 3) f32.

    Computes 2.0 * (coordinates * scale + trans), matching UniformBoxWarp.forward.
    """
    orig_shape = coordinates.shape
    assert orig_shape[-1] == 3, "last dim must be xyz (3)"
    assert lane_width % 384 == 0, "lane_width must be a multiple of lcm(3,128)=384"
    dtype = coordinates.dtype

    # Fold the 2.0 into the 3-element constants (free in the wrapper).
    scale2 = (2.0 * jnp.asarray(scale_factor, dtype=dtype)).reshape(3)
    trans2 = (2.0 * jnp.asarray(trans_factor, dtype=dtype)).reshape(3)

    L = lane_width
    total = 1
    for d in orig_shape:
        total *= d

    flat = coordinates.reshape(total)

    # Rows of the lane-dense slab; pad rows up to a multiple of the row-block.
    rows = pl.cdiv(total, L)
    tr = min(block_rows, ((rows + 7) // 8) * 8)  # multiple of 8 sublanes
    padded_rows = pl.cdiv(rows, tr) * tr
    padded_total = padded_rows * L
    if padded_total != total:
        flat = jnp.pad(flat, (0, padded_total - total))
    x2d = flat.reshape(padded_rows, L)

    # Pre-tile the xyz constants to one lane-dense row each.  Because L % 3 == 0,
    # flattened index (r*L + l) has xyz phase l % 3 in every row.
    reps = L // 3
    scale_row = jnp.tile(scale2, reps).reshape(1, L)
    trans_row = jnp.tile(trans2, reps).reshape(1, L)

    grid = (padded_rows // tr,)
    out2d = pl.pallas_call(
        _warp_kernel,
        out_shape=jax.ShapeDtypeStruct((padded_rows, L), dtype),
        grid_spec=pltpu.PrefetchScalarGridSpec(
            num_scalar_prefetch=0,
            grid=grid,
            in_specs=[
                pl.BlockSpec((1, L), lambda i: (0, 0)),   # 2*scale row (resident)
                pl.BlockSpec((1, L), lambda i: (0, 0)),   # 2*trans row (resident)
                pl.BlockSpec((tr, L), lambda i: (i, 0)),  # coords block
            ],
            out_specs=pl.BlockSpec((tr, L), lambda i: (i, 0)),
        ),
        compiler_params=pltpu.CompilerParams(
            dimension_semantics=("parallel",),   # megacore split of row-blocks
            vmem_limit_bytes=vmem_limit_bytes,
        ),
    )(scale_row, trans_row, x2d)

    return out2d.reshape(padded_total)[:total].reshape(orig_shape)


if __name__ == "__main__":
    # Deterministic "module init": scales / trans buffers of shape (1, 3).
    scales = jnp.asarray([0.5, 0.25, 2.0], dtype=jnp.float32).reshape(1, 3)
    trans = jnp.asarray([0.1, -0.2, 0.3], dtype=jnp.float32).reshape(1, 3)

    key = jax.random.PRNGKey(0)
    B, N = 2, 16
    coords = jax.random.normal(key, (B, N, 3), dtype=jnp.float32)

    out = uniform_box_warp(coords, scales, trans)
    out = jax.block_until_ready(out)

    # Reference check (plain JAX, mirrors the PyTorch forward: 3-D path).
    ref = 2.0 * (coords * scales[None] + trans[None])
    assert out.shape == coords.shape
    assert jnp.allclose(out, ref, atol=1e-6), "mismatch vs reference"

    # Also check the 2-D path (module's ndim==2 branch).
    coords2d = coords.reshape(B * N, 3)
    out2d = jax.block_until_ready(uniform_box_warp(coords2d, scales, trans))
    ref2d = 2.0 * (coords2d * scales + trans)
    assert jnp.allclose(out2d, ref2d, atol=1e-6), "mismatch vs 2-D reference"

    print("KERNEL_OK")
</pallas_src>

<mosaic_0001>
module attributes {stable_mosaic.version = 11 : i64} {
  func.func @_warp_kernel(%arg0: i32, %arg1: memref<1x1536xf32, #tpu.memory_space<vmem>>, %arg2: memref<1x1536xf32, #tpu.memory_space<vmem>>, %arg3: memref<8x1536xf32, #tpu.memory_space<vmem>>, %arg4: memref<8x1536xf32, #tpu.memory_space<vmem>>) attributes {dimension_semantics = [#tpu.dimension_semantics<parallel>], iteration_bounds = array<i64: 1>, scalar_prefetch = 0 : i64, scratch_operands = 0 : i64, tpu.core_type = #tpu.core_type<tc>, window_params = [{pipeline_mode = #tpu.pipeline_mode<synchronous>, transform_indices = @transform_0, window_bounds = array<i64: 1, 1536>}, {pipeline_mode = #tpu.pipeline_mode<synchronous>, transform_indices = @transform_1, window_bounds = array<i64: 1, 1536>}, {transform_indices = @transform_2, window_bounds = array<i64: 8, 1536>}, {transform_indices = @transform_3, window_bounds = array<i64: 8, 1536>}]} {
    %c0 = arith.constant 0 : index
    %c0_0 = arith.constant 0 : index
    %0 = vector.load %arg3[%c0, %c0_0] : memref<8x1536xf32, #tpu.memory_space<vmem>>, vector<8x1536xf32>
    %c0_1 = arith.constant 0 : index
    %c0_2 = arith.constant 0 : index
    %1 = vector.load %arg1[%c0_1, %c0_2] : memref<1x1536xf32, #tpu.memory_space<vmem>>, vector<1x1536xf32>
    %2 = vector.broadcast %1 : vector<1x1536xf32> to vector<8x1536xf32>
    %3 = arith.mulf %0, %2 : vector<8x1536xf32>
    %c0_3 = arith.constant 0 : index
    %c0_4 = arith.constant 0 : index
    %4 = vector.load %arg2[%c0_3, %c0_4] : memref<1x1536xf32, #tpu.memory_space<vmem>>, vector<1x1536xf32>
    %5 = vector.broadcast %4 : vector<1x1536xf32> to vector<8x1536xf32>
    %6 = arith.addf %3, %5 : vector<8x1536xf32>
    %c0_5 = arith.constant 0 : index
    %c0_6 = arith.constant 0 : index
    %7 = vector.load %arg4[%c0_5, %c0_6] : memref<8x1536xf32, #tpu.memory_space<vmem>>, vector<8x1536xf32>
    tpu.vector_store %arg4[%c0_5, %c0_6], %6 {strides = array<i32>} : memref<8x1536xf32, #tpu.memory_space<vmem>>, vector<8x1536xf32>,
    return
  }
  func.func @transform_0(%arg0: i32) -> (i32, i32) {
    %c0_i32 = arith.constant 0 : i32
    %c0_i32_0 = arith.constant 0 : i32
    %c0_i32_1 = arith.constant 0 : i32
    return %c0_i32, %c0_i32_0 : i32, i32
  }
  func.func @transform_1(%arg0: i32) -> (i32, i32) {
    %c0_i32 = arith.constant 0 : i32
    %c0_i32_0 = arith.constant 0 : i32
    %c0_i32_1 = arith.constant 0 : i32
    return %c0_i32, %c0_i32_0 : i32, i32
  }
  func.func @transform_2(%arg0: i32) -> (i32, i32) {
    %c0_i32 = arith.constant 0 : i32
    %c0_i32_0 = arith.constant 0 : i32
    return %arg0, %c0_i32 : i32, i32
  }
  func.func @transform_3(%arg0: i32) -> (i32, i32) {
    %c0_i32 = arith.constant 0 : i32
    %c0_i32_0 = arith.constant 0 : i32
    return %arg0, %c0_i32 : i32, i32
  }
}

</mosaic_0001>

<bundles_post_ra>
// kernel: tpu_custom_call.1
= control target key start
LH: loop header
LB: loop body
LE: loop exit
PB: predicated region body
PF: predicated region fallthrough
CT: control target
= control target key end

     0   :  { %8 = vsyncpa [#allocation3], 0  ;;  %s436_s0 = inlined_call_operand.hbm [shape: f32[1,1536], index: 0, kind: input, shape index: {}]   ;;  %s437_s1 = inlined_call_operand.hbm [shape: f32[1,1536], index: 1, kind: input, shape index: {}]   ;;  %s438_s2 = inlined_call_operand.hbm [shape: f32[8,1536], index: 2, kind: input, shape index: {}]   ;;  %s439_s3 = inlined_call_operand.hbm [shape: f32[8,1536], index: 3, kind: output, shape index: {}]  }
   0x1   :  { %9 = vsyncpa [#allocation6], 0 }
   0x2   :  { %10 = vsyncpa [#allocation4], 0  ;;  %s340_s12 = smov [#allocation5]   ;;  %s341_s14 = smov [#allocation2]  }
   0x3   :  { %s27_s13 = sshll.u32 %s340_s12, 4  ;;  %s17_s15 = sshll.u32 %s341_s14, 4  ;;  %s28_s13 = int_to_ptr.vmem [resolvable:$true] %s27_s13  ;;  %s18_s15 = int_to_ptr.vmem [resolvable:$true] %s17_s15 }
   0x4   :  { %s246_s18 = scalar_lea.hbm %s437_s1, 192 }
   0x5   :  { %p247_p0 = scmp.ne.s32.totalorder %s437_s1, %s246_s18  ;;  %p250_p1 = scmp.lt.u32.totalorder %s246_s18, %s437_s1 }
   0x7   :  { %p252_p2 = pnand %p250_p1, %p247_p0 }
   0x9   :  { %255 = shalt.err (!%p252_p2)
}
   0xa   :  { %s256_s23 = scalar_lea.vmem %s28_s13, 192  ;;  %p261_p4 = scmp.lt.s32.totalorder %s28_s13, %s28_s13 }
   0xb   :  { %p257_p3 = scmp.ne.s32.totalorder %s28_s13, %s256_s23  ;;  %p262_p5 = scmp.lt.s32.totalorder %s256_s23, %s256_s23 }
   0xd   :  { %p263_p6 = por %p262_p5, %p261_p4 }
   0xf   :  { %p264_p7 = pnand %p263_p6, %p257_p3 }
  0x11   :  { %267 = shalt.err (!%p264_p7)
}
  0x12   :  { %30 = dma.hbm_to_vmem [thread:$0]  %s437_s1, 192, %s28_s13, [#allocation6]  }
  0x13   :  { %s268_s28 = scalar_lea.hbm %s436_s0, 192 }
  0x14   :  { %p269_p8 = scmp.ne.s32.totalorder %s436_s0, %s268_s28  ;;  %p272_p9 = scmp.lt.u32.totalorder %s268_s28, %s436_s0 }
  0x16   :  { %p274_p10 = pnand %p272_p9, %p269_p8 }
  0x18   :  { %277 = shalt.err (!%p274_p10)
}
  0x19   :  { %s278_s6 = scalar_lea.vmem %s18_s15, 192  ;;  %p283_p12 = scmp.lt.s32.totalorder %s18_s15, %s18_s15 }
  0x1a   :  { %p279_p11 = scmp.ne.s32.totalorder %s18_s15, %s278_s6  ;;  %p284_p13 = scmp.lt.s32.totalorder %s278_s6, %s278_s6 }
  0x1c   :  { %p285_p0 = por %p284_p13, %p283_p12 }
  0x1e   :  { %p286_p1 = pnand %p285_p0, %p279_p11 }
  0x20   :  { %289 = shalt.err (!%p286_p1)
}
  0x21   :  { %20 = dma.hbm_to_vmem [thread:$0]  %s436_s0, 192, %s18_s15, [#allocation3]  }
  0x22   :  { %s342_s8 = smov [#allocation7]   ;;  %s290_s12 = scalar_lea.hbm %s438_s2, 1536 }
  0x23   :  { %s37_s9 = sshll.u32 %s342_s8, 4  ;;  %p291_p2 = scmp.ne.s32.totalorder %s438_s2, %s290_s12  ;;  %s38_s9 = int_to_ptr.vmem [resolvable:$true] %s37_s9 }
  0x24   :  { %p294_p3 = scmp.lt.u32.totalorder %s290_s12, %s438_s2 }
  0x26   :  { %p296_p4 = pnand %p294_p3, %p291_p2 }
  0x28   :  { %299 = shalt.err (!%p296_p4)
}
  0x29   :  { %s300_s18 = scalar_lea.vmem %s38_s9, 1536  ;;  %p305_p6 = scmp.lt.s32.totalorder %s38_s9, %s38_s9 }
  0x2a   :  { %p301_p5 = scmp.ne.s32.totalorder %s38_s9, %s300_s18  ;;  %p306_p7 = scmp.lt.s32.totalorder %s300_s18, %s300_s18 }
  0x2c   :  { %p307_p8 = por %p306_p7, %p305_p6 }
  0x2e   :  { %p308_p9 = pnand %p307_p8, %p301_p5 }
  0x30   :  { %311 = shalt.err (!%p308_p9)
}
  0x31   :  { %40 = dma.hbm_to_vmem [thread:$0]  %s438_s2, 1536, %s38_s9, [#allocation6]  }
  0x32   :  { %334 = dma.done.wait [#allocation3], 192  }
  0x33   :  { %335 = vsyncadd [#allocation3], 4294967104 }
  0x34   :  { %336 = dma.done.wait [#allocation6], 1728  }
  0x35   :  { %337 = vsyncadd [#allocation6], 4294965568  ;;  %v66_v0 = vlaneseq  ;;  %v50_v7 = vld [vmem:[#allocation7] sm:$0xff]  ;;  %v62_v8 = vld [vmem:[#allocation2] sm:$0xff]  ;;  %s343_s2 = smov [#allocation8]  }
  0x36   :  { %v138_v9 = vld [vmem:[#allocation5] sm:$0xff]  ;;  %v51_v15 = vld [vmem:[#allocation7 + $0x8] sm:$0xff]  ;;  %v54_v24 = vld [vmem:[#allocation7 + $0x20] sm:$0xff]  ;;  %s232_s19 = sshll.u32 %s343_s2, 4  ;;  %s233_s19 = int_to_ptr.vmem [resolvable:$true] %s232_s19 }
  0x37   :  { %v67_v1 = vshrl.u32 %v66_v0, 7  ;;  %v52_v18 = vld [vmem:[#allocation7 + $0x10] sm:$0xff]  ;;  %v53_v19 = vld [vmem:[#allocation7 + $0x18] sm:$0xff]  ;;  %v55_v29 = vld [vmem:[#allocation7 + $0x28] sm:$0xff]  ;;  %s312_s20 = scalar_lea.vmem %s233_s19, 1536  ;;  %p317_p11 = scmp.lt.s32.totalorder %s233_s19, %s233_s19 }
  0x38   :  { %v56_v34 = vld [vmem:[#allocation7 + $0x30] sm:$0xff]  ;;  %v139_v40 = vld [vmem:[#allocation5 + $0x8] sm:$0xf]  ;;  %v58_v50 = vld [vmem:[#allocation7 + $0x40] sm:$0xff]  ;;  %p313_p10 = scmp.ne.s32.totalorder %s233_s19, %s312_s20  ;;  %p318_p12 = scmp.lt.s32.totalorder %s312_s20, %s312_s20 }
  0x39   :  { %v400_v2 = vsub.s32 0, %v67_v1  ;;  %v402_v3 = vsub.s32 1, %v67_v1  ;;  %v404_v4 = vsub.s32 2, %v67_v1  ;;  %v406_v5 = vsub.s32 3, %v67_v1  ;;  %v63_v39 = vld [vmem:[#allocation2 + $0x8] sm:$0xf] }
  0x3a   :  { %v84_v6 = vsub.s32 4, %v67_v1  ;;  %v88_v10 = vsub.s32 5, %v67_v1  ;;  %v92_v11 = vsub.s32 6, %v67_v1  ;;  %v96_v12 = vsub.s32 7, %v67_v1  ;;  %v57_v45 = vld [vmem:[#allocation7 + $0x38] sm:$0xff]  ;;  %v59_v51 = vld [vmem:[#allocation7 + $0x48] sm:$0xff]  ;;  %p319_p13 = por %p318_p12, %p317_p11 }
  0x3b   :  { %v69_v13 = vrot.slane %v62_v8, %v400_v2  ;;  %v145_v14 = vrot.slane %v138_v9, %v400_v2  ;;  %v73_v16 = vrot.slane %v62_v8, %v402_v3  ;;  %v149_v17 = vrot.slane %v138_v9, %v402_v3  ;;  %v60_v56 = vld [vmem:[#allocation7 + $0x50] sm:$0xff]  ;;  %v61_v61 = vld [vmem:[#allocation7 + $0x58] sm:$0xff] }
  0x3c   :  { %v77_v20 = vrot.slane %v62_v8, %v404_v4  ;;  %v153_v21 = vrot.slane %v138_v9, %v404_v4  ;;  %v81_v22 = vrot.slane %v62_v8, %v406_v5  ;;  %v157_v23 = vrot.slane %v138_v9, %v406_v5  ;;  %p320_p0 = pnand %p319_p13, %p313_p10 }
  0x3d   :  { %v126_v25 = vmul.f32 %v69_v13, %v50_v7  ;;  %v127_v26 = vmul.f32 %v73_v16, %v51_v15  ;;  %v85_v27 = vrot.slane %v62_v8, %v84_v6  ;;  %v161_v28 = vrot.slane %v138_v9, %v84_v6 }
  0x3e   :  { %v128_v30 = vmul.f32 %v77_v20, %v52_v18  ;;  %v129_v31 = vmul.f32 %v81_v22, %v53_v19  ;;  %v89_v32 = vrot.slane %v62_v8, %v88_v10  ;;  %v165_v33 = vrot.slane %v138_v9, %v88_v10 }
  0x3f   :  { %v202_v35 = vadd.f32 %v145_v14, %v126_v25  ;;  %v203_v36 = vadd.f32 %v149_v17, %v127_v26  ;;  %v130_v37 = vmul.f32 %v85_v27, %v54_v24  ;;  %v93_v38 = vrot.slane %v62_v8, %v92_v11 }
  0x40   :  { %v204_v41 = vadd.f32 %v153_v21, %v128_v30  ;;  %v205_v42 = vadd.f32 %v157_v23, %v129_v31  ;;  %v131_v43 = vmul.f32 %v89_v32, %v55_v29  ;;  %v169_v44 = vrot.slane %v138_v9, %v92_v11 }
  0x41   :  { %214 = vst [vmem:[#allocation8] sm:$0xff] %v202_v35  ;;  %215 = vst [vmem:[#allocation8 + $0x8] sm:$0xff] %v203_v36  ;;  %v206_v46 = vadd.f32 %v161_v28, %v130_v37  ;;  %v132_v47 = vmul.f32 %v93_v38, %v56_v34  ;;  %v97_v48 = vrot.slane %v62_v8, %v96_v12 }
  0x42   :  { %v173_v49 = vrot.slane %v138_v9, %v96_v12  ;;  %216 = vst [vmem:[#allocation8 + $0x10] sm:$0xff] %v204_v41  ;;  %217 = vst [vmem:[#allocation8 + $0x18] sm:$0xff] %v205_v42  ;;  %v207_v52 = vadd.f32 %v165_v33, %v131_v43  ;;  %v101_v53 = vrot.slane %v63_v39, %v400_v2 }
  0x43   :  { %v177_v54 = vrot.slane %v139_v40, %v400_v2  ;;  %v105_v55 = vrot.slane %v63_v39, %v402_v3  ;;  %218 = vst [vmem:[#allocation8 + $0x20] sm:$0xff] %v206_v46  ;;  %v208_v57 = vadd.f32 %v169_v44, %v132_v47  ;;  %v133_v58 = vmul.f32 %v97_v48, %v57_v45 }
  0x44   :  { %v181_v59 = vrot.slane %v139_v40, %v402_v3  ;;  %v109_v60 = vrot.slane %v63_v39, %v404_v4  ;;  %219 = vst [vmem:[#allocation8 + $0x28] sm:$0xff] %v207_v52  ;;  %v134_v62 = vmul.f32 %v101_v53, %v58_v50  ;;  %v185_v0 = vrot.slane %v139_v40, %v404_v4 }
  0x45   :  { %v135_v63 = vmul.f32 %v105_v55, %v59_v51  ;;  %v113_v1 = vrot.slane %v63_v39, %v406_v5  ;;  %220 = vst [vmem:[#allocation8 + $0x30] sm:$0xff] %v208_v57  ;;  %v209_v2 = vadd.f32 %v173_v49, %v133_v58  ;;  %v189_v7 = vrot.slane %v139_v40, %v406_v5 }
  0x46   :  { %v136_v6 = vmul.f32 %v109_v60, %v60_v56  ;;  %v210_v8 = vadd.f32 %v177_v54, %v134_v62 }
  0x47   :  { %v211_v9 = vadd.f32 %v181_v59, %v135_v63  ;;  %v137_v3 = vmul.f32 %v113_v1, %v61_v61  ;;  %221 = vst [vmem:[#allocation8 + $0x38] sm:$0xff] %v209_v2 }
  0x48   :  { %v212_v10 = vadd.f32 %v185_v0, %v136_v6  ;;  %222 = vst [vmem:[#allocation8 + $0x40] sm:$0xff] %v210_v8 }
  0x49   :  { %223 = vst [vmem:[#allocation8 + $0x48] sm:$0xff] %v211_v9  ;;  %v213_v11 = vadd.f32 %v189_v7, %v137_v3 }
  0x4a   :  { %224 = vst [vmem:[#allocation8 + $0x50] sm:$0xff] %v212_v10 }
  0x4b   :  { %225 = vst [vmem:[#allocation8 + $0x58] sm:$0xff] %v213_v11 }
  0x4c   :  { %323 = shalt.err (!%p320_p0)
}
  0x4d   :  { %s324_s23 = scalar_lea.hbm %s439_s3, 1536 }
  0x4e   :  { %p325_p1 = scmp.ne.s32.totalorder %s439_s3, %s324_s23  ;;  %p328_p2 = scmp.lt.u32.totalorder %s324_s23, %s439_s3 }
  0x50   :  { %p330_p3 = pnand %p328_p2, %p325_p1 }
  0x52   :  { %333 = shalt.err (!%p330_p3)
}
  0x53   :  { %235 = dma.vmem_to_hbm [thread:$0]  %s233_s19, 1536, %s439_s3, [#allocation4]  }
  0x54   :  { %338 = dma.done.wait [#allocation4], 1536  }
  0x55   :  { %339 = vsyncadd [#allocation4], 4294965760 }
  0x56   :  { %239 = vsyncpa [#allocation3], 1 }
  0x57   :  { %240 = vsyncpa [#allocation6], 1 }
  0x58   :  { %241 = vsyncpa [#allocation4], 1 }

</bundles_post_ra>
